<compile_context>
chip_gen: v7x
topology: tpu7x:2x2x1
jax: 0.10.0
libtpu: 0.0.40
codegen_flags: <defaults>
</compile_context>

<pallas_src>
import functools
import numpy as np
import jax
import jax.numpy as jnp
from jax.experimental import pallas as pl
from jax.experimental.pallas import tpu as pltpu

LANES = 128  # lane-dense width for the padded weights / output


def _round_up(n, m):
    return ((n + m - 1) // m) * m


# ----------------------------------------------------------------------------
# One-time host-side parameter packing (hoisted out of the per-call path).
# ----------------------------------------------------------------------------
def pack_params(w1, b1, w2, b2, w3, b3, w4, b4):
    """Pack all MLExpert parameters into a single bf16 [rows, 128] slab.

    Layout (row offsets, 16-row aligned for bf16 sublane packing):
      [0      : D      ]  W1 padded to 128 output lanes (cols >= H are zero)
      [r_w2   : +128   ]  W2 padded to [128, 128] (rows/cols >= H are zero)
      [r_w3   : +128   ]  W3 padded to [128, 128]
      [r_wd   : +128   ]  +/- difference weight of the final Linear(H, 2):
                            lane 0 = w4[:,0]-w4[:,1], lane 1 = exact negation
      [r_b    : +4     ]  bias rows: b1, b2, b3, +/-(b4[0]-b4[1])
    """
    w1 = np.asarray(w1, np.float32)
    w2 = np.asarray(w2, np.float32)
    w3 = np.asarray(w3, np.float32)
    w4 = np.asarray(w4, np.float32)
    b1 = np.asarray(b1, np.float32).reshape(-1)
    b2 = np.asarray(b2, np.float32).reshape(-1)
    b3 = np.asarray(b3, np.float32).reshape(-1)
    b4 = np.asarray(b4, np.float32).reshape(-1)

    D, H = w1.shape
    assert H <= LANES and w4.shape == (H, 2)

    r_w2 = _round_up(D, 16)
    r_w3 = r_w2 + LANES
    r_wd = r_w3 + LANES
    r_b = r_wd + LANES
    rows = _round_up(r_b + 4, 16)

    slab = np.zeros((rows, LANES), np.float32)
    slab[0:D, 0:H] = w1
    slab[r_w2:r_w2 + H, 0:H] = w2
    slab[r_w3:r_w3 + H, 0:H] = w3

    dw = w4[:, 0] - w4[:, 1]
    slab[r_wd:r_wd + H, 0] = dw
    slab[r_wd:r_wd + H, 1] = -dw           # exact negation survives the bf16 cast

    slab[r_b + 0, 0:H] = b1
    slab[r_b + 1, 0:H] = b2
    slab[r_b + 2, 0:H] = b3
    db = float(b4[0] - b4[1])
    slab[r_b + 3, 0] = db
    slab[r_b + 3, 1] = -db

    layout = dict(d_in=D, r_w2=r_w2, r_w3=r_w3, r_wd=r_wd, r_b=r_b, rows=rows)
    return jnp.asarray(slab, dtype=jnp.bfloat16), layout


# ----------------------------------------------------------------------------
# Kernel: whole MLP + softmax fold, one batch block per grid step.
# ----------------------------------------------------------------------------
def _mlexpert_kernel(x_ref, p_ref, o_ref, *, d_in, r_w2, r_w3, r_wd, r_b):
    x = x_ref[...].astype(jnp.bfloat16)                                   # [TB, D]

    # Biases kept in f32 for the VPU/EUP epilogue math.
    b1 = p_ref[r_b + 0:r_b + 1, :].astype(jnp.float32)                    # [1, 128]
    b2 = p_ref[r_b + 1:r_b + 2, :].astype(jnp.float32)
    b3 = p_ref[r_b + 2:r_b + 3, :].astype(jnp.float32)
    bd = p_ref[r_b + 3:r_b + 4, :].astype(jnp.float32)

    # Hidden layers: bf16 MXU matmuls with f32 accumulation, f32 bias + ReLU.
    # Padding lanes (>= H) stay exactly zero through every layer.
    h = jnp.dot(x, p_ref[0:d_in, :], preferred_element_type=jnp.float32) + b1
    h = jnp.maximum(h, 0.0).astype(jnp.bfloat16)
    h = jnp.dot(h, p_ref[r_w2:r_w2 + LANES, :],
                preferred_element_type=jnp.float32) + b2
    h = jnp.maximum(h, 0.0).astype(jnp.bfloat16)
    h = jnp.dot(h, p_ref[r_w3:r_w3 + LANES, :],
                preferred_element_type=jnp.float32) + b3
    h = jnp.maximum(h, 0.0).astype(jnp.bfloat16)                          # [TB, 128]

    # Final Linear(H, 2) + Softmax folded into per-lane sigmoids:
    #   lane 0: sigmoid(z0 - z1) == softmax(z)[0]
    #   lane 1: sigmoid(z1 - z0) == softmax(z)[1]
    #   lanes >= 2: sigmoid(0) = 0.5 (sliced away by the wrapper)
    d = jnp.dot(h, p_ref[r_wd:r_wd + LANES, :],
                preferred_element_type=jnp.float32) + bd                  # [TB, 128]
    o_ref[...] = 1.0 / (1.0 + jnp.exp(-d))


# ----------------------------------------------------------------------------
# Forward builder (constructed once, reused across calls).
# ----------------------------------------------------------------------------
def make_mlexpert_forward(layout, batch, block_b=None):
    if block_b is None:
        block_b = batch if batch <= 512 else 256   # amortize / shard at scale
    assert batch % block_b == 0 and block_b % 8 == 0
    d_in = layout["d_in"]
    rows = layout["rows"]

    kernel = functools.partial(
        _mlexpert_kernel,
        d_in=d_in, r_w2=layout["r_w2"], r_w3=layout["r_w3"],
        r_wd=layout["r_wd"], r_b=layout["r_b"])

    call = pl.pallas_call(
        kernel,
        out_shape=jax.ShapeDtypeStruct((batch, LANES), jnp.float32),
        grid_spec=pltpu.PrefetchScalarGridSpec(
            num_scalar_prefetch=0,
            grid=(batch // block_b,),
            in_specs=[
                pl.BlockSpec((block_b, d_in), lambda i: (i, 0)),   # stream x
                pl.BlockSpec((rows, LANES), lambda i: (0, 0)),     # resident params
            ],
            out_specs=pl.BlockSpec((block_b, LANES), lambda i: (i, 0)),
        ),
        compiler_params=pltpu.CompilerParams(
            dimension_semantics=("parallel",)),
    )

    @jax.jit
    def forward(x, param_slab):
        return call(x, param_slab)[:, :2]          # [B, 2] softmax probabilities

    return forward


# ----------------------------------------------------------------------------
# Pure-JAX reference matching the PyTorch module.
# ----------------------------------------------------------------------------
def mlexpert_ref(x, w1, b1, w2, b2, w3, b3, w4, b4):
    h = jnp.maximum(x @ w1 + b1, 0.0)
    h = jnp.maximum(h @ w2 + b2, 0.0)
    h = jnp.maximum(h @ w3 + b3, 0.0)
    z = h @ w4 + b4
    return jax.nn.softmax(z, axis=-1)


if __name__ == "__main__":
    B, D, H = 8, 32, 8   # batch, input_dim, hidden_dim (module default hidden_dim=8)

    key = jax.random.PRNGKey(0)
    ks = jax.random.split(key, 9)

    x = jax.random.normal(ks[0], (B, D), dtype=jnp.float32)
    w1 = jax.random.normal(ks[1], (D, H), dtype=jnp.float32) * 0.3
    b1 = jax.random.normal(ks[2], (1, H), dtype=jnp.float32) * 0.1
    w2 = jax.random.normal(ks[3], (H, H), dtype=jnp.float32) * 0.3
    b2 = jax.random.normal(ks[4], (1, H), dtype=jnp.float32) * 0.1
    w3 = jax.random.normal(ks[5], (H, H), dtype=jnp.float32) * 0.3
    b3 = jax.random.normal(ks[6], (1, H), dtype=jnp.float32) * 0.1
    w4 = jax.random.normal(ks[7], (H, 2), dtype=jnp.float32) * 0.3
    b4 = jax.random.normal(ks[8], (1, 2), dtype=jnp.float32) * 0.1

    # One-time packing (hoisted out of the per-call path), then the reusable fwd.
    param_slab, layout = pack_params(w1, b1, w2, b2, w3, b3, w4, b4)
    forward = make_mlexpert_forward(layout, batch=B)

    y = forward(x, param_slab)
    jax.block_until_ready(y)

    assert y.shape == (B, 2)
    y_ref = mlexpert_ref(x, w1, b1, w2, b2, w3, b3, w4, b4)
    # Tolerance reflects bf16 matmul operands (weights + activation casts);
    # the softmax->sigmoid fold itself is exact and the sigmoid is exact f32.
    np.testing.assert_allclose(np.asarray(y), np.asarray(y_ref), rtol=2e-2, atol=2e-2)
    # Row sums are 1 to f32 precision by construction (lane 1 logit is the exact
    # negation of lane 0's).
    np.testing.assert_allclose(np.asarray(y).sum(axis=-1), np.ones(B),
                               rtol=1e-4, atol=1e-4)

    print("KERNEL_OK")
</pallas_src>

<mosaic_0001>
module attributes {stable_mosaic.version = 11 : i64} {
  func.func @_mlexpert_kernel(%arg0: i32, %arg1: memref<8x32xf32, #tpu.memory_space<vmem>>, %arg2: memref<432x128xbf16, #tpu.memory_space<vmem>>, %arg3: memref<8x128xf32, #tpu.memory_space<vmem>>) attributes {dimension_semantics = [#tpu.dimension_semantics<parallel>], iteration_bounds = array<i64: 1>, scalar_prefetch = 0 : i64, scratch_operands = 0 : i64, tpu.core_type = #tpu.core_type<tc>, window_params = [{transform_indices = @transform_0, window_bounds = array<i64: 8, 32>}, {pipeline_mode = #tpu.pipeline_mode<synchronous>, transform_indices = @transform_1, window_bounds = array<i64: 432, 128>}, {transform_indices = @transform_2, window_bounds = array<i64: 8, 128>}]} {
    %c0 = arith.constant 0 : index
    %c0_0 = arith.constant 0 : index
    %0 = vector.load %arg1[%c0, %c0_0] : memref<8x32xf32, #tpu.memory_space<vmem>>, vector<8x32xf32>
    %1 = arith.truncf %0 : vector<8x32xf32> to vector<8x32xbf16>
    %c416 = arith.constant 416 : index
    %c0_1 = arith.constant 0 : index
    %2 = vector.load %arg2[%c416, %c0_1] : memref<432x128xbf16, #tpu.memory_space<vmem>>, vector<1x128xbf16>
    %3 = arith.extf %2 : vector<1x128xbf16> to vector<1x128xf32>
    %c417 = arith.constant 417 : index
    %c0_2 = arith.constant 0 : index
    %4 = vector.load %arg2[%c417, %c0_2] : memref<432x128xbf16, #tpu.memory_space<vmem>>, vector<1x128xbf16>
    %5 = arith.extf %4 : vector<1x128xbf16> to vector<1x128xf32>
    %c418 = arith.constant 418 : index
    %c0_3 = arith.constant 0 : index
    %6 = vector.load %arg2[%c418, %c0_3] : memref<432x128xbf16, #tpu.memory_space<vmem>>, vector<1x128xbf16>
    %7 = arith.extf %6 : vector<1x128xbf16> to vector<1x128xf32>
    %c419 = arith.constant 419 : index
    %c0_4 = arith.constant 0 : index
    %8 = vector.load %arg2[%c419, %c0_4] : memref<432x128xbf16, #tpu.memory_space<vmem>>, vector<1x128xbf16>
    %9 = arith.extf %8 : vector<1x128xbf16> to vector<1x128xf32>
    %c0_5 = arith.constant 0 : index
    %c0_6 = arith.constant 0 : index
    %10 = vector.load %arg2[%c0_5, %c0_6] : memref<432x128xbf16, #tpu.memory_space<vmem>>, vector<32x128xbf16>
    %cst = arith.constant dense<0.000000e+00> : vector<8x128xf32>
    %11 = tpu.matmul %1, %10, %cst {dimension_numbers = #tpu.dot_dimension_numbers<[1], [0], [0], [1], [0, 0, 1, 1], [], []>} : vector<8x32xbf16>, vector<32x128xbf16>, vector<8x128xf32> -> vector<8x128xf32>
    %12 = vector.broadcast %3 : vector<1x128xf32> to vector<8x128xf32>
    %13 = arith.addf %11, %12 : vector<8x128xf32>
    %cst_7 = arith.constant 0.000000e+00 : f32
    %14 = vector.broadcast %cst_7 : f32 to vector<8x128xf32>
    %15 = arith.maximumf %13, %14 : vector<8x128xf32>
    %16 = arith.truncf %15 : vector<8x128xf32> to vector<8x128xbf16>
    %c32 = arith.constant 32 : index
    %c0_8 = arith.constant 0 : index
    %17 = vector.load %arg2[%c32, %c0_8] : memref<432x128xbf16, #tpu.memory_space<vmem>>, vector<128x128xbf16>
    %cst_9 = arith.constant dense<0.000000e+00> : vector<8x128xf32>
    %18 = tpu.matmul %16, %17, %cst_9 {dimension_numbers = #tpu.dot_dimension_numbers<[1], [0], [0], [1], [0, 0, 1, 1], [], []>} : vector<8x128xbf16>, vector<128x128xbf16>, vector<8x128xf32> -> vector<8x128xf32>
    %19 = vector.broadcast %5 : vector<1x128xf32> to vector<8x128xf32>
    %20 = arith.addf %18, %19 : vector<8x128xf32>
    %cst_10 = arith.constant 0.000000e+00 : f32
    %21 = vector.broadcast %cst_10 : f32 to vector<8x128xf32>
    %22 = arith.maximumf %20, %21 : vector<8x128xf32>
    %23 = arith.truncf %22 : vector<8x128xf32> to vector<8x128xbf16>
    %c160 = arith.constant 160 : index
    %c0_11 = arith.constant 0 : index
    %24 = vector.load %arg2[%c160, %c0_11] : memref<432x128xbf16, #tpu.memory_space<vmem>>, vector<128x128xbf16>
    %cst_12 = arith.constant dense<0.000000e+00> : vector<8x128xf32>
    %25 = tpu.matmul %23, %24, %cst_12 {dimension_numbers = #tpu.dot_dimension_numbers<[1], [0], [0], [1], [0, 0, 1, 1], [], []>} : vector<8x128xbf16>, vector<128x128xbf16>, vector<8x128xf32> -> vector<8x128xf32>
    %26 = vector.broadcast %7 : vector<1x128xf32> to vector<8x128xf32>
    %27 = arith.addf %25, %26 : vector<8x128xf32>
    %cst_13 = arith.constant 0.000000e+00 : f32
    %28 = vector.broadcast %cst_13 : f32 to vector<8x128xf32>
    %29 = arith.maximumf %27, %28 : vector<8x128xf32>
    %30 = arith.truncf %29 : vector<8x128xf32> to vector<8x128xbf16>
    %c288 = arith.constant 288 : index
    %c0_14 = arith.constant 0 : index
    %31 = vector.load %arg2[%c288, %c0_14] : memref<432x128xbf16, #tpu.memory_space<vmem>>, vector<128x128xbf16>
    %cst_15 = arith.constant dense<0.000000e+00> : vector<8x128xf32>
    %32 = tpu.matmul %30, %31, %cst_15 {dimension_numbers = #tpu.dot_dimension_numbers<[1], [0], [0], [1], [0, 0, 1, 1], [], []>} : vector<8x128xbf16>, vector<128x128xbf16>, vector<8x128xf32> -> vector<8x128xf32>
    %33 = vector.broadcast %9 : vector<1x128xf32> to vector<8x128xf32>
    %34 = arith.addf %32, %33 : vector<8x128xf32>
    %cst_16 = arith.constant 0.000000e+00 : f32
    %35 = vector.broadcast %cst_16 : f32 to vector<8x128xf32>
    %36 = arith.subf %35, %34 : vector<8x128xf32>
    %37 = math.exp %36 : vector<8x128xf32>
    %cst_17 = arith.constant 1.000000e+00 : f32
    %38 = vector.broadcast %cst_17 : f32 to vector<8x128xf32>
    %39 = arith.addf %38, %37 : vector<8x128xf32>
    %cst_18 = arith.constant 1.000000e+00 : f32
    %40 = vector.broadcast %cst_18 : f32 to vector<8x128xf32>
    %41 = arith.divf %40, %39 : vector<8x128xf32>
    %c0_19 = arith.constant 0 : index
    %c0_20 = arith.constant 0 : index
    %42 = vector.load %arg3[%c0_19, %c0_20] : memref<8x128xf32, #tpu.memory_space<vmem>>, vector<8x128xf32>
    tpu.vector_store %arg3[%c0_19, %c0_20], %41 {strides = array<i32>} : memref<8x128xf32, #tpu.memory_space<vmem>>, vector<8x128xf32>,
    return
  }
  func.func @transform_0(%arg0: i32) -> (i32, i32) {
    %c0_i32 = arith.constant 0 : i32
    %c0_i32_0 = arith.constant 0 : i32
    return %arg0, %c0_i32 : i32, i32
  }
  func.func @transform_1(%arg0: i32) -> (i32, i32) {
    %c0_i32 = arith.constant 0 : i32
    %c0_i32_0 = arith.constant 0 : i32
    %c0_i32_1 = arith.constant 0 : i32
    return %c0_i32, %c0_i32_0 : i32, i32
  }
  func.func @transform_2(%arg0: i32) -> (i32, i32) {
    %c0_i32 = arith.constant 0 : i32
    %c0_i32_0 = arith.constant 0 : i32
    return %arg0, %c0_i32 : i32, i32
  }
}

</mosaic_0001>

<bundles_post_ra>
// kernel: forward.1
= control target key start
LH: loop header
LB: loop body
LE: loop exit
PB: predicated region body
PF: predicated region fallthrough
CT: control target
= control target key end

     0   :  { %7 = vsyncpa [#allocation3], 0  ;;  %s755_s0 = inlined_call_operand.hbm [shape: f32[8,32], index: 0, kind: input, shape index: {}]   ;;  %s756_s1 = inlined_call_operand.hbm [shape: bf16[432,128], index: 1, kind: input, shape index: {}]   ;;  %s757_s2 = inlined_call_operand.vmem [shape: f32[8,128], index: 2, kind: output, shape index: {}]  }
   0x1   :  { %8 = vsyncpa [#allocation5], 0  ;;  %s660_s9 = smov [#allocation2]   ;;  %s661_s11 = smov [#allocation4]  }
   0x2   :  { %s15_s10 = sshll.u32 %s660_s9, 4  ;;  %s24_s12 = sshll.u32 %s661_s11, 4  ;;  %s16_s10 = int_to_ptr.vmem [resolvable:$true] %s15_s10  ;;  %s681_s12 = int_to_ptr.vmem [resolvable:$true] %s24_s12 }
   0x3   :  { %s612_s15 = scalar_lea.hbm %s755_s0, 128 }
   0x4   :  { %p613_p0 = scmp.ne.s32.totalorder %s755_s0, %s612_s15  ;;  %p616_p1 = scmp.lt.u32.totalorder %s612_s15, %s755_s0 }
   0x6   :  { %p618_p2 = pnand %p616_p1, %p613_p0 }
   0x8   :  { %621 = shalt.err (!%p618_p2)
}
   0x9   :  { %s622_s20 = scalar_lea.vmem %s16_s10, 128  ;;  %p627_p4 = scmp.lt.s32.totalorder %s16_s10, %s16_s10 }
   0xa   :  { %p623_p3 = scmp.ne.s32.totalorder %s16_s10, %s622_s20  ;;  %p628_p5 = scmp.lt.s32.totalorder %s622_s20, %s622_s20 }
   0xc   :  { %p629_p6 = por %p628_p5, %p627_p4 }
   0xe   :  { %p630_p7 = pnand %p629_p6, %p623_p3 }
  0x10   :  { %633 = shalt.err (!%p630_p7)
}
  0x11   :  { %18 = dma.hbm_to_vmem [thread:$0]  %s755_s0, 128, %s16_s10, [#allocation3]  }
  0x12   :  { %s634_s25 = scalar_lea.hbm %s756_s1, 3456 }
  0x13   :  { %p635_p8 = scmp.ne.s32.totalorder %s756_s1, %s634_s25  ;;  %p638_p9 = scmp.lt.u32.totalorder %s634_s25, %s756_s1 }
  0x15   :  { %p640_p10 = pnand %p638_p9, %p635_p8 }
  0x17   :  { %643 = shalt.err (!%p640_p10)
}
  0x18   :  { %s644_s30 = scalar_lea.vmem %s681_s12, 3456  ;;  %p649_p12 = scmp.lt.s32.totalorder %s681_s12, %s681_s12 }
  0x19   :  { %p645_p11 = scmp.ne.s32.totalorder %s681_s12, %s644_s30  ;;  %p650_p13 = scmp.lt.s32.totalorder %s644_s30, %s644_s30 }
  0x1b   :  { %p651_p0 = por %p650_p13, %p649_p12 }
  0x1d   :  { %p652_p1 = pnand %p651_p0, %p645_p11 }
  0x1f   :  { %655 = shalt.err (!%p652_p1)
}
  0x20   :  { %s662_s0 = smov 64   ;;  %s663_s3 = smov 4  }
  0x21   :  { %30 = dma.hbm_to_vmem [thread:$0]  %s756_s1, 3456, %s681_s12, [#allocation5], %s662_s0, %s662_s0, %s663_s3  }
  0x22   :  { %656 = dma.done.wait [#allocation3], 128  }
  0x23   :  { %657 = vsyncadd [#allocation3], 4294967168 }
  0x24   :  { %658 = dma.done.wait [#allocation5], 3456  }
  0x25   :  { %659 = vsyncadd [#allocation5], 4294963840  ;;  %v664_v0 = vmov 0.0   ;;  %vm665_vm0 = vmmov 0   ;;  %v582_v1 = vld [vmem:[#allocation4] sm:$0xff]   ;;  %v583_v2 = vld [vmem:[#allocation4 + $0x8] sm:$0xff]   ;;  %v48_v19 = vlaneseq }
  0x26   :  { %508 = vmatprep.subr.bf16.mxu0 %v664_v0  ;;  %512 = vmatprep.mubr.msk.bf16.mxu0 %vm665_vm0, %v664_v0  ;;  %v38_v3 = vld [vmem:[#allocation2] sm:$0xff]  ;;  %v584_v4 = vld [vmem:[#allocation4 + $0x10] sm:$0xff]   ;;  %vm64_vm1 = vcmask 261120   ;;  %v586_v7 = vld [vmem:[#allocation4 + $0x20] sm:$0xff]  }
  0x27   :  { %516 = vmatprep.subr.bf16.mxu1 %v664_v0  ;;  %532 = vmatprep.mubr.msk.bf16.mxu1 %vm665_vm0, %v664_v0  ;;  %v39_v5 = vpack.c.bf16 %v38_v3, %v38_v3  ;;  %v585_v6 = vld [vmem:[#allocation4 + $0x18] sm:$0xff]   ;;  %v587_v8 = vld [vmem:[#allocation4 + $0x28] sm:$0xff]   ;;  %v588_v9 = vld [vmem:[#allocation4 + $0x30] sm:$0xff]   ;;  %v736_v20 = vshrl.u32 %v48_v19, 7 }
  0x28   :  { %509 = vmatpush3.bf16.msra.mxu0 %v582_v1  ;;  %517 = vmatpush3.bf16.msra.mxu1 %v584_v4  ;;  %v589_v10 = vld [vmem:[#allocation4 + $0x38] sm:$0xff]   ;;  %v590_v11 = vld [vmem:[#allocation4 + $0x40] sm:$0xff]   ;;  %v591_v12 = vld [vmem:[#allocation4 + $0x48] sm:$0xff]  }
  0x29   :  { %510 = vmatprep.subr.bf16.mxu0 %v664_v0  ;;  %518 = vmatprep.subr.bf16.mxu1 %v664_v0  ;;  %v592_v13 = vld [vmem:[#allocation4 + $0x50] sm:$0xff]   ;;  %v593_v14 = vld [vmem:[#allocation4 + $0x58] sm:$0xff]   ;;  %v594_v15 = vld [vmem:[#allocation4 + $0x60] sm:$0xff]   ;;  %v50_v23 = vsub.s32 0, %v736_v20  ;;  %v128_v40 = vsub.s32 1, %v736_v20  ;;  %v238_v53 = vsub.s32 2, %v736_v20 }
  0x2a   :  { %v595_v16 = vld [vmem:[#allocation4 + $0x68] sm:$0xff]   ;;  %v596_v17 = vld [vmem:[#allocation4 + $0x70] sm:$0xff]   ;;  %v597_v18 = vld [vmem:[#allocation4 + $0x78] sm:$0xff]   ;;  %v348_v62 = vsub.s32 3, %v736_v20 }
  0x2b   :  { %v40_v21 = vld [vmem:[#allocation4 + $0xd0] sm:$0x1]  ;;  %v598_v32 = vld [vmem:[#allocation4 + $0x80] sm:$0xff]   ;;  %v599_v33 = vld [vmem:[#allocation4 + $0x88] sm:$0xff]  }
  0x2c   :  { %511 = vmatpush3.bf16.msra.mxu0 %v583_v2  ;;  %519 = vmatpush3.bf16.msra.mxu1 %v585_v6  ;;  %v41_v22 = vunpack.c.l.bf16 %v40_v21  ;;  %v600_v34 = vld [vmem:[#allocation4 + $0x90] sm:$0xff]   ;;  %v601_v35 = vld [vmem:[#allocation4 + $0x98] sm:$0xff]   ;;  %v602_v36 = vld [vmem:[#allocation4 + $0xa0] sm:$0xff]  }
  0x2d   :  { %536 = vmatprep.subr.bf16.mxu0 %v664_v0  ;;  %520 = vmatprep.subr.bf16.mxu1 %v664_v0  ;;  %v603_v37 = vld [vmem:[#allocation4 + $0xa8] sm:$0xff]   ;;  %v604_v38 = vld [vmem:[#allocation4 + $0xb0] sm:$0xff]   ;;  %v605_v39 = vld [vmem:[#allocation4 + $0xb8] sm:$0xff]  }
  0x2e   :  { %v51_v24 = vrot.slane %v41_v22, %v50_v23  ;;  %v129_v41 = vrot.slane %v41_v22, %v128_v40  ;;  %v606_v49 = vld [vmem:[#allocation4 + $0xc0] sm:$0xff]   ;;  %v607_v50 = vld [vmem:[#allocation4 + $0xc8] sm:$0xff]   ;;  %v42_v51 = vld [vmem:[#allocation4 + $0xd0] sm:$0x2] }
  0x2f   :  { %513 = vmatmul.mubr.msk.bf16.vlgmr.msra.gmra.mrb[0].mxu0 %vm64_vm1, %v39_v5  ;;  %v43_v52 = vunpack.c.l.bf16 %v42_v51 }
  0x30   :  { %552 = vmatprep.mubr.msk.bf16.mxu0 %vm665_vm0, %v664_v0  ;;  %521 = vmatpush3.bf16.msra.mxu1 %v586_v7 }
  0x31   :  { %522 = vmatprep.subr.bf16.mxu1 %v664_v0  ;;  %537 = vmatpush3.bf16.msra.mxu0 %v592_v13  ;;  %v239_v54 = vrot.slane %v43_v52, %v238_v53  ;;  %v349_v63 = vrot.slane %v43_v52, %v348_v62 }
  0x32   :  { %538 = vmatprep.subr.bf16.mxu0 %v664_v0 }
  0x34   :  { %523 = vmatpush3.bf16.msra.mxu1 %v587_v8 }
  0x35   :  { %524 = vmatprep.subr.bf16.mxu1 %v664_v0  ;;  %539 = vmatpush3.bf16.msra.mxu0 %v593_v14 }
  0x36   :  { %540 = vmatprep.subr.bf16.mxu0 %v664_v0 }
  0x38   :  { %525 = vmatpush3.bf16.msra.mxu1 %v588_v9 }
  0x39   :  { %526 = vmatprep.subr.bf16.mxu1 %v664_v0  ;;  %541 = vmatpush3.bf16.msra.mxu0 %v594_v15 }
  0x3a   :  { %542 = vmatprep.subr.bf16.mxu0 %v664_v0 }
  0x3c   :  { %527 = vmatpush3.bf16.msra.mxu1 %v589_v10 }
  0x3d   :  { %528 = vmatprep.subr.bf16.mxu1 %v664_v0  ;;  %543 = vmatpush3.bf16.msra.mxu0 %v595_v16 }
  0x3e   :  { %544 = vmatprep.subr.bf16.mxu0 %v664_v0 }
  0x40   :  { %529 = vmatpush3.bf16.msra.mxu1 %v590_v11 }
  0x41   :  { %530 = vmatprep.subr.bf16.mxu1 %v664_v0  ;;  %545 = vmatpush3.bf16.msra.mxu0 %v596_v17 }
  0x42   :  { %546 = vmatprep.subr.bf16.mxu0 %v664_v0 }
  0x44   :  { %531 = vmatpush3.bf16.msra.mxu1 %v591_v12 }
  0x45   :  { %556 = vmatprep.subr.bf16.mxu1 %v664_v0  ;;  %547 = vmatpush3.bf16.msra.mxu0 %v597_v18 }
  0x46   :  { %548 = vmatprep.subr.bf16.mxu0 %v664_v0 }
  0x49   :  { %549 = vmatpush3.bf16.msra.mxu0 %v598_v32 }
  0x4a   :  { %550 = vmatprep.subr.bf16.mxu0 %v664_v0 }
  0x4d   :  { %551 = vmatpush3.bf16.msra.mxu0 %v599_v33 }
 0x102   :  { %v102_v25 = vpop.f32.mrb[0].mxu0 }
 0x103   :  { %v103_v26 = vadd.f32 %v102_v25, %v51_v24  ;;  %v514_v27 = vpop.f32.mrb[1].mxu0 }
 0x104   :  { %v105_v28 = vpop.f32.mrb[2].mxu0 }
 0x105   :  { %v108_v29 = vmax.f32 %v103_v26, 0.0  ;;  %v515_v30 = vpop.f32.mrb[3].mxu0 }
 0x107   :  { %v109_v31 = vpack.c.bf16 %v108_v29, %v108_v29 }
 0x109   :  { %533 = vmatmul.mubr.bf16.vlgmr.msra.gmra.mrb[0].mxu1 %v109_v31 }
 0x10a   :  { %572 = vmatprep.mubr.msk.bf16.mxu1 %vm665_vm0, %v664_v0  ;;  %557 = vmatpush3.bf16.msra.mxu1 %v600_v34 }
 0x10b   :  { %558 = vmatprep.subr.bf16.mxu1 %v664_v0 }
 0x10e   :  { %559 = vmatpush3.bf16.msra.mxu1 %v601_v35 }
 0x10f   :  { %560 = vmatprep.subr.bf16.mxu1 %v664_v0 }
 0x112   :  { %561 = vmatpush3.bf16.msra.mxu1 %v602_v36 }
 0x113   :  { %562 = vmatprep.subr.bf16.mxu1 %v664_v0 }
 0x116   :  { %563 = vmatpush3.bf16.msra.mxu1 %v603_v37 }
 0x117   :  { %564 = vmatprep.subr.bf16.mxu1 %v664_v0 }
 0x11a   :  { %565 = vmatpush3.bf16.msra.mxu1 %v604_v38 }
 0x11b   :  { %566 = vmatprep.subr.bf16.mxu1 %v664_v0 }
 0x11e   :  { %567 = vmatpush3.bf16.msra.mxu1 %v605_v39 }
 0x11f   :  { %568 = vmatprep.subr.bf16.mxu1 %v664_v0 }
 0x122   :  { %569 = vmatpush3.bf16.msra.mxu1 %v606_v49 }
 0x123   :  { %570 = vmatprep.subr.bf16.mxu1 %v664_v0 }
 0x126   :  { %571 = vmatpush3.bf16.msra.mxu1 %v607_v50 }
 0x1dc   :  { %v212_v42 = vpop.f32.mrb[0].mxu1 }
 0x1dd   :  { %v213_v43 = vadd.f32 %v212_v42, %v129_v41  ;;  %v534_v44 = vpop.f32.mrb[1].mxu1 }
 0x1de   :  { %v215_v45 = vpop.f32.mrb[2].mxu1 }
 0x1df   :  { %v218_v46 = vmax.f32 %v213_v43, 0.0  ;;  %v535_v47 = vpop.f32.mrb[3].mxu1 }
 0x1e1   :  { %v219_v48 = vpack.c.bf16 %v218_v46, %v218_v46 }
 0x1e3   :  { %553 = vmatmul.mubr.bf16.vlgmr.msra.gmra.mrb[4].mxu0 %v219_v48 }
 0x2b6   :  { %v322_v55 = vpop.f32.mrb[4].mxu0 }
 0x2b7   :  { %v323_v56 = vadd.f32 %v322_v55, %v239_v54  ;;  %v554_v57 = vpop.f32.mrb[5].mxu0 }
 0x2b8   :  { %v325_v58 = vpop.f32.mrb[6].mxu0 }
 0x2b9   :  { %v328_v59 = vmax.f32 %v323_v56, 0.0  ;;  %v555_v60 = vpop.f32.mrb[7].mxu0 }
 0x2bb   :  { %v329_v61 = vpack.c.bf16 %v328_v59, %v328_v59 }
 0x2bd   :  { %573 = vmatmul.mubr.bf16.vlgmr.msra.gmra.mrb[4].mxu1 %v329_v61 }
 0x390   :  { %v432_v1 = vpop.f32.mrb[4].mxu1 }
 0x391   :  { %v433_v0 = vadd.f32 %v432_v1, %v349_v63  ;;  %v574_v2 = vpop.f32.mrb[5].mxu1 }
 0x392   :  { %v435_v3 = vpop.f32.mrb[6].mxu1 }
 0x393   :  { %v438_v4 = vsub.f32 0.0, %v433_v0  ;;  %v575_v5 = vpop.f32.mrb[7].mxu1 }
 0x395   :  { %v439_v6 = vmul.f32 1.442695, %v438_v4 }
 0x397   :  { %608 = vpow2.f32 %v439_v6 }
 0x3a1   :  { %v609_v7 = vpop.eup %608 }
 0x3a2   :  { %v441_v8 = vadd.f32 1.0, %v609_v7 }
 0x3a4   :  { %610 = vrcp.f32 %v441_v8 }
 0x3ae   :  { %v611_v9 = vpop.eup %610 }
 0x3af   :  { %444 = vst [vmem:[%s757_s2] sm:$0xff] %v611_v9 }
 0x3b0   :  { %449 = vsyncpa [#allocation3], 1 }
 0x3b1   :  { %450 = vsyncpa [#allocation5], 1 }

</bundles_post_ra>
